<compile_context>
chip_gen: v6e
topology: v6e:2x2x1
jax: 0.10.0
libtpu: 0.0.40
codegen_flags: <defaults>
</compile_context>

<pallas_src>
import functools

import jax
import jax.numpy as jnp
from jax.experimental import pallas as pl
from jax.experimental.pallas import tpu as pltpu

# TODO(synk): the pretrained text_encoder / image_encoder transformers are not
# reimplemented; their pooled 768-d outputs are passed in as kernel inputs.

HIDDEN = 768      # encoder pooler_output width (fixed by the module)
SIM_EMB = 128     # sim_emb projection width
BATCH = 8         # number of (text, image) pairs
EPS = 1e-12       # F.normalize default eps


def contrastive_kernel(x_ref, w_ref, b_ref, temp_ref, out_ref, *,
                       b_text, sim_emb):
    # --- fused projection: [B_t+B_i, 768] bf16 @ [768, 2*sim_emb] bf16 ---
    # (single MXU pass with M=2B, N=256, K=768; f32 accumulation)
    proj = jnp.dot(x_ref[...], w_ref[...],
                   preferred_element_type=jnp.float32)
    proj = jnp.maximum(proj + b_ref[...], 0.0)          # bias (f32) + ReLU

    # Slice out the wanted blocks:  text @ wt  and  image @ wi.
    t_proj = proj[:b_text, :sim_emb]
    i_proj = proj[b_text:, sim_emb:]

    inv_temp = 1.0 / temp_ref[0, 0]

    # --- L2 normalize (F.normalize p=2, dim=1) via rsqrt on the EUP.
    # rsqrt(max(sumsq, eps^2)) == 1 / max(norm, eps).  Fold 1/temperature
    # into the text-feature scale so the sim matmul result is final.
    t_ss = jnp.sum(t_proj * t_proj, axis=1, keepdims=True)
    t_feat = t_proj * (jax.lax.rsqrt(jnp.maximum(t_ss, EPS * EPS)) * inv_temp)

    i_ss = jnp.sum(i_proj * i_proj, axis=1, keepdims=True)
    i_feat = i_proj * jax.lax.rsqrt(jnp.maximum(i_ss, EPS * EPS))

    # --- cosine-similarity matrix: contract the feature axes directly
    # (no explicit transpose / XLU relayout of i_feat).
    out_ref[...] = jax.lax.dot_general(
        t_feat, i_feat,
        dimension_numbers=(((1,), (1,)), ((), ())),
        preferred_element_type=jnp.float32)


def contrastive_forward(text_pool, image_pool, wt, bt, wi, bi, temperature):
    """text_pool/image_pool: [B, 768]; wt/wi: [768, sim_emb]; bt/bi: [1, sim_emb];
    temperature: [1, 1].  Returns [B_text, B_image] similarity matrix."""
    B_t = text_pool.shape[0]
    B_i = image_pool.shape[0]
    sim_emb = wt.shape[1]
    hidden = wt.shape[0]

    # Fuse the two projections into one matmul's operands (bf16 for the MXU,
    # halves weight/activation HBM traffic; accumulation stays f32 in-kernel).
    x = jnp.concatenate([text_pool, image_pool], axis=0).astype(jnp.bfloat16)
    w = jnp.concatenate([wt, wi], axis=1).astype(jnp.bfloat16)
    b = jnp.concatenate([bt, bi], axis=1).astype(jnp.float32)
    temp = temperature.astype(jnp.float32)

    flops = (2 * (B_t + B_i) * hidden * (2 * sim_emb)   # fused projection
             + 2 * B_t * B_i * sim_emb)                  # similarity matmul
    bytes_accessed = (x.size * 2 + w.size * 2 + b.size * 4 + 4
                      + B_t * B_i * 4)

    kernel = functools.partial(contrastive_kernel, b_text=B_t, sim_emb=sim_emb)

    return pl.pallas_call(
        kernel,
        out_shape=jax.ShapeDtypeStruct((B_t, B_i), jnp.float32),
        in_specs=[
            pl.BlockSpec(memory_space=pltpu.VMEM),  # fused pooled inputs (bf16)
            pl.BlockSpec(memory_space=pltpu.VMEM),  # fused projection weight (bf16)
            pl.BlockSpec(memory_space=pltpu.VMEM),  # fused projection bias (f32)
            pl.BlockSpec(memory_space=pltpu.SMEM),  # temperature scalar
        ],
        out_specs=pl.BlockSpec(memory_space=pltpu.VMEM),
        cost_estimate=pl.CostEstimate(
            flops=flops,
            transcendentals=2 * (B_t + B_i),          # rsqrt per row
            bytes_accessed=bytes_accessed),
    )(x, w, b, temp)


def reference_forward(text_pool, image_pool, wt, bt, wi, bi, temperature):
    """Plain-JAX f32 reference mirroring the PyTorch forward (post-encoder)."""
    tf = jnp.maximum(text_pool @ wt + bt, 0.0)
    imf = jnp.maximum(image_pool @ wi + bi, 0.0)
    tf = tf / jnp.maximum(jnp.linalg.norm(tf, axis=1, keepdims=True), EPS)
    imf = imf / jnp.maximum(jnp.linalg.norm(imf, axis=1, keepdims=True), EPS)
    return (tf @ imf.T) / temperature[0, 0]


if __name__ == "__main__":
    key = jax.random.PRNGKey(0)
    k_text, k_img, k_wt, k_bt, k_wi, k_bi = jax.random.split(key, 6)

    # Synthetic encoder pooler outputs (standing in for AutoModel(...).pooler_output).
    text_pool = jax.random.normal(k_text, (BATCH, HIDDEN), dtype=jnp.float32)
    image_pool = jax.random.normal(k_img, (BATCH, HIDDEN), dtype=jnp.float32)

    # Deterministic parameter init (Linear(768, sim_emb) for each projection).
    scale = 1.0 / jnp.sqrt(jnp.float32(HIDDEN))
    wt = jax.random.uniform(k_wt, (HIDDEN, SIM_EMB), jnp.float32, -scale, scale)
    bt = jax.random.uniform(k_bt, (1, SIM_EMB), jnp.float32, -scale, scale)
    wi = jax.random.uniform(k_wi, (HIDDEN, SIM_EMB), jnp.float32, -scale, scale)
    bi = jax.random.uniform(k_bi, (1, SIM_EMB), jnp.float32, -scale, scale)
    temperature = jnp.full((1, 1), 0.02, dtype=jnp.float32)

    out = contrastive_forward(text_pool, image_pool, wt, bt, wi, bi, temperature)
    out = jax.block_until_ready(out)

    ref = reference_forward(text_pool, image_pool, wt, bt, wi, bi, temperature)
    assert out.shape == (BATCH, BATCH)
    # Tolerance loosened for the bf16 inputs/weights (f32 accumulation kept);
    # values are scaled by 1/temperature = 50, so allow ~2% relative error.
    assert jnp.allclose(out, ref, atol=1e-1, rtol=2e-2), "mismatch vs reference"

    print("KERNEL_OK")
</pallas_src>

<mosaic_0001>
module attributes {stable_mosaic.version = 11 : i64} {
  func.func @contrastive_kernel(%arg0: memref<16x768xbf16, #tpu.memory_space<vmem>>, %arg1: memref<768x256xbf16, #tpu.memory_space<vmem>>, %arg2: memref<1x256xf32, #tpu.memory_space<vmem>>, %arg3: memref<1x1xf32, #tpu.memory_space<smem>>, %arg4: memref<8x8xf32, #tpu.memory_space<vmem>>) attributes {dimension_semantics = [], scalar_prefetch = 0 : i64, scratch_operands = 0 : i64, tpu.core_type = #tpu.core_type<tc>} {
    %c0 = arith.constant 0 : index
    %c0_0 = arith.constant 0 : index
    %0 = vector.load %arg0[%c0, %c0_0] : memref<16x768xbf16, #tpu.memory_space<vmem>>, vector<16x768xbf16>
    %c0_1 = arith.constant 0 : index
    %c0_2 = arith.constant 0 : index
    %1 = vector.load %arg1[%c0_1, %c0_2] : memref<768x256xbf16, #tpu.memory_space<vmem>>, vector<768x256xbf16>
    %cst = arith.constant dense<0.000000e+00> : vector<16x256xf32>
    %2 = tpu.matmul %0, %1, %cst {dimension_numbers = #tpu.dot_dimension_numbers<[1], [0], [0], [1], [0, 0, 1, 1], [], []>} : vector<16x768xbf16>, vector<768x256xbf16>, vector<16x256xf32> -> vector<16x256xf32>
    %c0_3 = arith.constant 0 : index
    %c0_4 = arith.constant 0 : index
    %3 = vector.load %arg2[%c0_3, %c0_4] : memref<1x256xf32, #tpu.memory_space<vmem>>, vector<1x256xf32>
    %4 = vector.broadcast %3 : vector<1x256xf32> to vector<16x256xf32>
    %5 = arith.addf %2, %4 : vector<16x256xf32>
    %cst_5 = arith.constant 0.000000e+00 : f32
    %6 = vector.broadcast %cst_5 : f32 to vector<16x256xf32>
    %7 = arith.maximumf %5, %6 : vector<16x256xf32>
    %8 = vector.extract_strided_slice %7 {offsets = [0, 0], sizes = [8, 128], strides = [1, 1]} : vector<16x256xf32> to vector<8x128xf32>
    %9 = vector.extract_strided_slice %7 {offsets = [8, 128], sizes = [8, 128], strides = [1, 1]} : vector<16x256xf32> to vector<8x128xf32>
    %c0_6 = arith.constant 0 : index
    %c0_7 = arith.constant 0 : index
    %10 = memref.load %arg3[%c0_6, %c0_7] : memref<1x1xf32, #tpu.memory_space<smem>>
    %cst_8 = arith.constant 1.000000e+00 : f32
    %11 = arith.divf %cst_8, %10 : f32
    %12 = arith.mulf %8, %8 : vector<8x128xf32>
    %cst_9 = arith.constant dense<0.000000e+00> : vector<8xf32>
    %13 = vector.multi_reduction <add>, %12, %cst_9 [1] : vector<8x128xf32> to vector<8xf32>
    %14 = vector.shape_cast %13 : vector<8xf32> to vector<8x1xf32>
    %cst_10 = arith.constant 1.000000e-24 : f32
    %15 = vector.broadcast %cst_10 : f32 to vector<8x1xf32>
    %16 = arith.maximumf %14, %15 : vector<8x1xf32>
    %17 = math.rsqrt %16 : vector<8x1xf32>
    %18 = vector.broadcast %11 : f32 to vector<8x1xf32>
    %19 = arith.mulf %17, %18 : vector<8x1xf32>
    %20 = vector.broadcast %19 : vector<8x1xf32> to vector<8x128xf32>
    %21 = arith.mulf %8, %20 : vector<8x128xf32>
    %22 = arith.mulf %9, %9 : vector<8x128xf32>
    %cst_11 = arith.constant dense<0.000000e+00> : vector<8xf32>
    %23 = vector.multi_reduction <add>, %22, %cst_11 [1] : vector<8x128xf32> to vector<8xf32>
    %24 = vector.shape_cast %23 : vector<8xf32> to vector<8x1xf32>
    %cst_12 = arith.constant 1.000000e-24 : f32
    %25 = vector.broadcast %cst_12 : f32 to vector<8x1xf32>
    %26 = arith.maximumf %24, %25 : vector<8x1xf32>
    %27 = math.rsqrt %26 : vector<8x1xf32>
    %28 = vector.broadcast %27 : vector<8x1xf32> to vector<8x128xf32>
    %29 = arith.mulf %9, %28 : vector<8x128xf32>
    %cst_13 = arith.constant dense<0.000000e+00> : vector<8x8xf32>
    %30 = tpu.matmul %21, %29, %cst_13 {dimension_numbers = #tpu.dot_dimension_numbers<[1], [1], [0], [0], [0, 0, 1, 0], [], []>} : vector<8x128xf32>, vector<8x128xf32>, vector<8x8xf32> -> vector<8x8xf32>
    %c0_14 = arith.constant 0 : index
    %c0_15 = arith.constant 0 : index
    %31 = vector.load %arg4[%c0_14, %c0_15] : memref<8x8xf32, #tpu.memory_space<vmem>>, vector<8x8xf32>
    tpu.vector_store %arg4[%c0_14, %c0_15], %30 {strides = array<i32>} : memref<8x8xf32, #tpu.memory_space<vmem>>, vector<8x8xf32>,
    return
  }
}

</mosaic_0001>

<bundles_post_ra>
// kernel: tpu_custom_call.1
= control target key start
LH: loop header
LB: loop body
LE: loop exit
PB: predicated region body
PF: predicated region fallthrough
CT: control target
= control target key end

     0   :  { %10 = vsyncpa [#allocation4], 0  ;;  %s1296_s0 = inlined_call_operand.hbm [shape: bf16[16,768], index: 0, kind: input, shape index: {}]   ;;  %s1297_s1 = inlined_call_operand.hbm [shape: bf16[768,256], index: 1, kind: input, shape index: {}]   ;;  %s1298_s2 = inlined_call_operand.vmem [shape: f32[1,256], index: 2, kind: input, shape index: {}]   ;;  %s1299_s3 = inlined_call_operand.<no memory space> [shape: f32[1,1], index: 3, kind: input, shape index: {}]   ;;  %s1300_s4 = inlined_call_operand.hbm [shape: f32[8,8], index: 4, kind: output, shape index: {}]  }
   0x1   :  { %11 = vsyncpa [#allocation7], 0 }
   0x2   :  { %12 = vsyncpa [#allocation5], 0  ;;  %s1247_s15 = smov [#allocation3]  }
   0x3   :  { %s18_s16 = sshll.u32 %s1247_s15, 4  ;;  %s19_s16 = int_to_ptr.vmem [resolvable:$true] %s18_s16 }
   0x4   :  { %s1189_s17 = scalar_lea.vmem %s19_s16, 768  ;;  %p1194_p1 = scmp.lt.s32.totalorder %s19_s16, %s19_s16 }
   0x5   :  { %p1190_p0 = scmp.ne.s32.totalorder %s19_s16, %s1189_s17  ;;  %p1195_p2 = scmp.lt.s32.totalorder %s1189_s17, %s1189_s17 }
   0x7   :  { %p1196_p3 = por %p1195_p2, %p1194_p1 }
   0x9   :  { %p1197_p4 = pnand %p1196_p3, %p1190_p0 }
   0xb   :  { %1200 = shalt.err (!%p1197_p4)
}
   0xc   :  { %s1248_s18 = smov 384   ;;  %s1249_s19 = smov 24  }
   0xd   :  { %24 = dma.hbm_to_vmem [thread:$0]  %s1296_s0, 768, %s19_s16, [#allocation4], %s1248_s18, %s1248_s18, %s1249_s19  }
   0xe   :  { %s1250_s22 = smov [#allocation6]  }
   0xf   :  { %s30_s23 = sshll.u32 %s1250_s22, 4  ;;  %s31_s23 = int_to_ptr.vmem [resolvable:$true] %s30_s23 }
  0x10   :  { %s1209_s24 = scalar_lea.vmem %s31_s23, 12288  ;;  %p1214_p6 = scmp.lt.s32.totalorder %s31_s23, %s31_s23 }
  0x11   :  { %p1210_p5 = scmp.ne.s32.totalorder %s31_s23, %s1209_s24  ;;  %p1215_p7 = scmp.lt.s32.totalorder %s1209_s24, %s1209_s24 }
  0x13   :  { %p1216_p8 = por %p1215_p7, %p1214_p6 }
  0x15   :  { %p1217_p9 = pnand %p1216_p8, %p1210_p5 }
  0x17   :  { %1220 = shalt.err (!%p1217_p9)
}
  0x18   :  { %s1251_s25 = smov 128   ;;  %s1252_s26 = smov 8  }
  0x19   :  { %36 = dma.hbm_to_vmem [thread:$0]  %s1297_s1, 12288, %s31_s23, [#allocation7], %s1251_s25, %s1251_s25, %s1252_s26  }
  0x1a   :  { %1241 = dma.done.wait [#allocation4], 768  }
  0x1b   :  { %1242 = vsyncadd [#allocation4], 4294966528 }
  0x1c   :  { %1243 = dma.done.wait [#allocation7], 12288  }
  0x1d   :  { %1244 = vsyncadd [#allocation7], 4294955008  ;;  %v1022_v0 = vld [vmem:[#allocation6 + $0x74] ss:$8 sps:$4 sm:$0xff]   ;;  %v1024_v1 = vld [vmem:[#allocation6 + $0x70] ss:$8 sps:$4 sm:$0xff]  }
  0x1e   :  { %671 = vmatprep.subr.bf16.mxu0 %v1022_v0  ;;  %v1025_v2 = vld [vmem:[#allocation6 + $0x174] ss:$8 sps:$4 sm:$0xff]   ;;  %v1027_v3 = vld [vmem:[#allocation6 + $0x170] ss:$8 sps:$4 sm:$0xff]   ;;  %v1028_v4 = vld [vmem:[#allocation6 + $0x64] ss:$8 sps:$4 sm:$0xff]  }
  0x1f   :  { %672 = vmatpush1.bf16.msra.mxu0 %v1024_v1  ;;  %v1030_v5 = vld [vmem:[#allocation6 + $0x60] ss:$8 sps:$4 sm:$0xff]   ;;  %712 = vmatprep.subr.bf16.mxu1 %v1025_v2  ;;  %v1031_v6 = vld [vmem:[#allocation6 + $0x164] ss:$8 sps:$4 sm:$0xff]   ;;  %v1034_v8 = vld [vmem:[#allocation6 + $0x54] ss:$8 sps:$4 sm:$0xff]  }
  0x20   :  { %713 = vmatpush1.bf16.msra.mxu1 %v1027_v3  ;;  %673 = vmatprep.subr.bf16.mxu0 %v1028_v4  ;;  %v1033_v7 = vld [vmem:[#allocation6 + $0x160] ss:$8 sps:$4 sm:$0xff]   ;;  %v1036_v9 = vld [vmem:[#allocation6 + $0x50] ss:$8 sps:$4 sm:$0xff]   ;;  %v1037_v10 = vld [vmem:[#allocation6 + $0x154] ss:$8 sps:$4 sm:$0xff]  }
  0x21   :  { %714 = vmatprep.subr.bf16.mxu1 %v1031_v6  ;;  %v1040_v11 = vld [vmem:[#allocation6 + $0x44] ss:$8 sps:$4 sm:$0xff]   ;;  %v1039_v12 = vld [vmem:[#allocation6 + $0x150] ss:$8 sps:$4 sm:$0xff]   ;;  %v1042_v14 = vld [vmem:[#allocation6 + $0x40] ss:$8 sps:$4 sm:$0xff]  }
  0x22   :  { %v1043_v13 = vld [vmem:[#allocation6 + $0x144] ss:$8 sps:$4 sm:$0xff]   ;;  %v1046_v15 = vld [vmem:[#allocation6 + $0x34] ss:$8 sps:$4 sm:$0xff]   ;;  %v1045_v16 = vld [vmem:[#allocation6 + $0x140] ss:$8 sps:$4 sm:$0xff]  }
  0x23   :  { %674 = vmatpush1.bf16.msra.mxu0 %v1030_v5  ;;  %v1049_v17 = vld [vmem:[#allocation6 + $0x134] ss:$8 sps:$4 sm:$0xff]   ;;  %v1048_v18 = vld [vmem:[#allocation6 + $0x30] ss:$8 sps:$4 sm:$0xff]   ;;  %v1052_v19 = vld [vmem:[#allocation6 + $0x24] ss:$8 sps:$4 sm:$0xff]  }
  0x24   :  { %675 = vmatprep.subr.bf16.mxu0 %v1034_v8  ;;  %715 = vmatpush1.bf16.msra.mxu1 %v1033_v7  ;;  %v1051_v20 = vld [vmem:[#allocation6 + $0x130] ss:$8 sps:$4 sm:$0xff]   ;;  %v1055_v21 = vld [vmem:[#allocation6 + $0x124] ss:$8 sps:$4 sm:$0xff]   ;;  %v1054_v22 = vld [vmem:[#allocation6 + $0x20] ss:$8 sps:$4 sm:$0xff]  }
  0x25   :  { %716 = vmatprep.subr.bf16.mxu1 %v1037_v10  ;;  %v1058_v23 = vld [vmem:[#allocation6 + $0x14] ss:$8 sps:$4 sm:$0xff]   ;;  %v1057_v24 = vld [vmem:[#allocation6 + $0x120] ss:$8 sps:$4 sm:$0xff]   ;;  %v1060_v26 = vld [vmem:[#allocation6 + $0x10] ss:$8 sps:$4 sm:$0xff]  }
  0x26   :  { %v1061_v25 = vld [vmem:[#allocation6 + $0x114] ss:$8 sps:$4 sm:$0xff]   ;;  %v1064_v27 = vld [vmem:[#allocation6 + $0x4] ss:$8 sps:$4 sm:$0xff]   ;;  %v1063_v28 = vld [vmem:[#allocation6 + $0x110] ss:$8 sps:$4 sm:$0xff]  }
  0x27   :  { %676 = vmatpush1.bf16.msra.mxu0 %v1036_v9  ;;  %v1067_v29 = vld [vmem:[#allocation6 + $0x104] ss:$8 sps:$4 sm:$0xff]   ;;  %v1066_v30 = vld [vmem:[#allocation6] ss:$8 sps:$4 sm:$0xff]   ;;  %v1070_v31 = vld [vmem:[#allocation6 + $0xf4] ss:$8 sps:$4 sm:$0xff]  }
  0x28   :  { %677 = vmatprep.subr.bf16.mxu0 %v1040_v11  ;;  %717 = vmatpush1.bf16.msra.mxu1 %v1039_v12  ;;  %v1069_v32 = vld [vmem:[#allocation6 + $0x100] ss:$8 sps:$4 sm:$0xff]   ;;  %v1073_v33 = vld [vmem:[#allocation6 + $0x1f4] ss:$8 sps:$4 sm:$0xff]   ;;  %v1072_v34 = vld [vmem:[#allocation6 + $0xf0] ss:$8 sps:$4 sm:$0xff]  }
  0x29   :  { %718 = vmatprep.subr.bf16.mxu1 %v1043_v13  ;;  %v1076_v35 = vld [vmem:[#allocation6 + $0xe4] ss:$8 sps:$4 sm:$0xff]   ;;  %v1075_v36 = vld [vmem:[#allocation6 + $0x1f0] ss:$8 sps:$4 sm:$0xff]   ;;  %v1078_v38 = vld [vmem:[#allocation6 + $0xe0] ss:$8 sps:$4 sm:$0xff]  }
  0x2a   :  { %v1079_v37 = vld [vmem:[#allocation6 + $0x1e4] ss:$8 sps:$4 sm:$0xff]   ;;  %v1082_v39 = vld [vmem:[#allocation6 + $0xd4] ss:$8 sps:$4 sm:$0xff]   ;;  %v1081_v40 = vld [vmem:[#allocation6 + $0x1e0] ss:$8 sps:$4 sm:$0xff]  }
  0x2b   :  { %678 = vmatpush1.bf16.msra.mxu0 %v1042_v14  ;;  %v1085_v41 = vld [vmem:[#allocation6 + $0x1d4] ss:$8 sps:$4 sm:$0xff]   ;;  %v1084_v42 = vld [vmem:[#allocation6 + $0xd0] ss:$8 sps:$4 sm:$0xff]   ;;  %v1088_v43 = vld [vmem:[#allocation6 + $0xc4] ss:$8 sps:$4 sm:$0xff]  }
  0x2c   :  { %679 = vmatprep.subr.bf16.mxu0 %v1046_v15  ;;  %719 = vmatpush1.bf16.msra.mxu1 %v1045_v16  ;;  %v1087_v44 = vld [vmem:[#allocation6 + $0x1d0] ss:$8 sps:$4 sm:$0xff]   ;;  %v1091_v45 = vld [vmem:[#allocation6 + $0x1c4] ss:$8 sps:$4 sm:$0xff]   ;;  %v1090_v46 = vld [vmem:[#allocation6 + $0xc0] ss:$8 sps:$4 sm:$0xff]  }
  0x2d   :  { %720 = vmatprep.subr.bf16.mxu1 %v1049_v17  ;;  %v1119_v47 = vld [vmem:[#allocation3 + $0x4] ss:$24 sps:$4 sm:$0xff]   ;;  %v1093_v49 = vld [vmem:[#allocation6 + $0x1c0] ss:$8 sps:$4 sm:$0xff]   ;;  %v1096_v52 = vld [vmem:[#allocation6 + $0xb0] ss:$8 sps:$4 sm:$0xff]  }
  0x2e   :  { %v1094_v48 = vld [vmem:[#allocation6 + $0xb4] ss:$8 sps:$4 sm:$0xff]   ;;  %703 = vmatprep.mubr.bf16.mxu0 %v1119_v47  ;;  %v1100_v53 = vld [vmem:[#allocation6 + $0xa4] ss:$8 sps:$4 sm:$0xff]   ;;  %v1099_v54 = vld [vmem:[#allocation6 + $0x1b0] ss:$8 sps:$4 sm:$0xff]  }
  0x2f   :  { %680 = vmatpush1.bf16.msra.mxu0 %v1048_v18  ;;  %v1097_v50 = vld [vmem:[#allocation6 + $0x1b4] ss:$8 sps:$4 sm:$0xff]   ;;  %v1103_v55 = vld [vmem:[#allocation6 + $0x1a4] ss:$8 sps:$4 sm:$0xff]   ;;  %v1102_v56 = vld [vmem:[#allocation6 + $0xa0] ss:$8 sps:$4 sm:$0xff]  }
  0x30   :  { %681 = vmatprep.subr.bf16.mxu0 %v1052_v19  ;;  %721 = vmatpush1.bf16.msra.mxu1 %v1051_v20  ;;  %v1126_v51 = vld [vmem:[#allocation3 + $0xc] ss:$24 sps:$4 sm:$0xff]   ;;  %v1105_v58 = vld [vmem:[#allocation6 + $0x1a0] ss:$8 sps:$4 sm:$0xff]   ;;  %v1108_v60 = vld [vmem:[#allocation6 + $0x90] ss:$8 sps:$4 sm:$0xff]  }
  0x31   :  { %722 = vmatprep.subr.bf16.mxu1 %v1055_v21  ;;  %744 = vmatprep.mubr.bf16.mxu1 %v1126_v51  ;;  %v1106_v57 = vld [vmem:[#allocation6 + $0x94] ss:$8 sps:$4 sm:$0xff]   ;;  %v1112_v61 = vld [vmem:[#allocation6 + $0x84] ss:$8 sps:$4 sm:$0xff]   ;;  %v1111_v62 = vld [vmem:[#allocation6 + $0x190] ss:$8 sps:$4 sm:$0xff]  }
  0x32   :  { %v1109_v59 = vld [vmem:[#allocation6 + $0x194] ss:$8 sps:$4 sm:$0xff]   ;;  %v1115_v63 = vld [vmem:[#allocation6 + $0x184] ss:$8 sps:$4 sm:$0xff]   ;;  %v1114_v0 = vld [vmem:[#allocation6 + $0x80] ss:$8 sps:$4 sm:$0xff]  }
  0x33   :  { %682 = vmatpush1.bf16.msra.mxu0 %v1054_v22  ;;  %v1123_v1 = vld [vmem:[#allocation6 + $0x274] ss:$8 sps:$4 sm:$0xff]   ;;  %v1120_v2 = vld [vmem:[#allocation6 + $0x180] ss:$8 sps:$4 sm:$0xff]   ;;  %v1121_v4 = vld [vmem:[#allocation6 + $0x270] ss:$8 sps:$4 sm:$0xff]  }
  0x34   :  { %683 = vmatprep.subr.bf16.mxu0 %v1058_v23  ;;  %723 = vmatpush1.bf16.msra.mxu1 %v1057_v24  ;;  %v1117_v3 = vld [vmem:[#allocation3] ss:$24 sps:$4 sm:$0xff]   ;;  %v1129_v6 = vld [vmem:[#allocation6 + $0x264] ss:$8 sps:$4 sm:$0xff]   ;;  %v1132_v9 = vld [vmem:[#allocation6 + $0x254] ss:$8 sps:$4 sm:$0xff]  }
  0x35   :  { %724 = vmatprep.subr.bf16.mxu1 %v1061_v25  ;;  %v1124_v5 = vld [vmem:[#allocation3 + $0x8] ss:$24 sps:$4 sm:$0xff]   ;;  %v1127_v7 = vld [vmem:[#allocation6 + $0x260] ss:$8 sps:$4 sm:$0xff]   ;;  %v1174_v8 = vld [vmem:[#allocation3 + $0x14] ss:$24 sps:$4 sm:$0xff]  }
  0x36   :  { %v1130_v10 = vld [vmem:[#allocation6 + $0x250] ss:$8 sps:$4 sm:$0xff]   ;;  %v1135_v11 = vld [vmem:[#allocation6 + $0x244] ss:$8 sps:$4 sm:$0xff]   ;;  %v1133_v12 = vld [vmem:[#allocation6 + $0x240] ss:$8 sps:$4 sm:$0xff]  }
  0x37   :  { %684 = vmatpush1.bf16.msra.mxu0 %v1060_v26  ;;  %v1138_v13 = vld [vmem:[#allocation6 + $0x234] ss:$8 sps:$4 sm:$0xff]   ;;  %v1136_v14 = vld [vmem:[#allocation6 + $0x230] ss:$8 sps:$4 sm:$0xff]   ;;  %v1141_v15 = vld [vmem:[#allocation6 + $0x224] ss:$8 sps:$4 sm:$0xff]  }
  0x38   :  { %685 = vmatprep.subr.bf16.mxu0 %v1064_v27  ;;  %725 = vmatpush1.bf16.msra.mxu1 %v1063_v28  ;;  %v1139_v16 = vld [vmem:[#allocation6 + $0x220] ss:$8 sps:$4 sm:$0xff]   ;;  %v1144_v17 = vld [vmem:[#allocation6 + $0x214] ss:$8 sps:$4 sm:$0xff]   ;;  %v1142_v18 = vld [vmem:[#allocation6 + $0x210] ss:$8 sps:$4 sm:$0xff]  }
  0x39   :  { %726 = vmatprep.subr.bf16.mxu1 %v1067_v29  ;;  %v1147_v19 = vld [vmem:[#allocation6 + $0x204] ss:$8 sps:$4 sm:$0xff]   ;;  %v1145_v20 = vld [vmem:[#allocation6 + $0x200] ss:$8 sps:$4 sm:$0xff]   ;;  %v1150_v21 = vld [vmem:[#allocation6 + $0x2f4] ss:$8 sps:$4 sm:$0xff]  }
  0x3a   :  { %v1148_v22 = vld [vmem:[#allocation6 + $0x2f0] ss:$8 sps:$4 sm:$0xff]   ;;  %v1153_v23 = vld [vmem:[#allocation6 + $0x2e4] ss:$8 sps:$4 sm:$0xff]   ;;  %v1151_v24 = vld [vmem:[#allocation6 + $0x2e0] ss:$8 sps:$4 sm:$0xff]  }
  0x3b   :  { %686 = vmatpush1.bf16.msra.mxu0 %v1066_v30  ;;  %v1156_v25 = vld [vmem:[#allocation6 + $0x2d4] ss:$8 sps:$4 sm:$0xff]   ;;  %v1154_v26 = vld [vmem:[#allocation6 + $0x2d0] ss:$8 sps:$4 sm:$0xff]   ;;  %v1159_v27 = vld [vmem:[#allocation6 + $0x2c4] ss:$8 sps:$4 sm:$0xff]  }
  0x3c   :  { %687 = vmatprep.subr.bf16.mxu0 %v1070_v31  ;;  %727 = vmatpush1.bf16.msra.mxu1 %v1069_v32  ;;  %v1157_v28 = vld [vmem:[#allocation6 + $0x2c0] ss:$8 sps:$4 sm:$0xff]   ;;  %v1162_v29 = vld [vmem:[#allocation6 + $0x2b4] ss:$8 sps:$4 sm:$0xff]   ;;  %v1160_v30 = vld [vmem:[#allocation6 + $0x2b0] ss:$8 sps:$4 sm:$0xff]  }
  0x3d   :  { %728 = vmatprep.subr.bf16.mxu1 %v1073_v33  ;;  %v1165_v31 = vld [vmem:[#allocation6 + $0x2a4] ss:$8 sps:$4 sm:$0xff]   ;;  %v1163_v32 = vld [vmem:[#allocation6 + $0x2a0] ss:$8 sps:$4 sm:$0xff]   ;;  %v1168_v33 = vld [vmem:[#allocation6 + $0x294] ss:$8 sps:$4 sm:$0xff]  }
  0x3e   :  { %vm1254_vm0 = vmmov 0   ;;  %vm884_vm1 = vcmask 64512  }
  0x3f   :  { %688 = vmatpush2.bf16.msra.mxu0 %v1072_v34  ;;  %v1166_v34 = vld [vmem:[#allocation6 + $0x290] ss:$8 sps:$4 sm:$0xff]  }
  0x40   :  { %689 = vmatprep.subr.bf16.mxu0 %v1076_v35  ;;  %729 = vmatpush2.bf16.msra.mxu1 %v1075_v36  ;;  %v1171_v35 = vld [vmem:[#allocation6 + $0x284] ss:$8 sps:$4 sm:$0xff]   ;;  %v1169_v36 = vld [vmem:[#allocation6 + $0x280] ss:$8 sps:$4 sm:$0xff]  }
  0x41   :  { %730 = vmatprep.subr.bf16.mxu1 %v1079_v37  ;;  %v1172_v37 = vld [vmem:[#allocation3 + $0x10] ss:$24 sps:$4 sm:$0xff]  }
  0x43   :  { %690 = vmatpush2.bf16.msra.mxu0 %v1078_v38  ;;  %v797_v38 = vstv %s1299_s3  ;;  %s1255_s3 = smov [#allocation8]  }
  0x44   :  { %691 = vmatprep.subr.bf16.mxu0 %v1082_v39  ;;  %731 = vmatpush2.bf16.msra.mxu1 %v1081_v40  ;;  %1175 = vrcp.f32 %v797_v38  ;;  %v151_v40 = vlaneseq  ;;  %s892_s5 = sshll.u32 %s1255_s3, 4  ;;  %s893_s5 = int_to_ptr.vmem [resolvable:$true] %s892_s5 }
  0x45   :  { %732 = vmatprep.subr.bf16.mxu1 %v1085_v41  ;;  %s1221_s6 = scalar_lea.vmem %s893_s5, 128  ;;  %p1226_p11 = scmp.lt.s32.totalorder %s893_s5, %s893_s5 }
  0x46   :  { %v152_v41 = vshrl.u32 %v151_v40, 7  ;;  %p1222_p10 = scmp.ne.s32.totalorder %s893_s5, %s1221_s6  ;;  %p1227_p12 = scmp.lt.s32.totalorder %s1221_s6, %s1221_s6 }
  0x47   :  { %692 = vmatpush2.bf16.msra.mxu0 %v1084_v42 }
  0x48   :  { %693 = vmatprep.subr.bf16.mxu0 %v1088_v43  ;;  %733 = vmatpush2.bf16.msra.mxu1 %v1087_v44  ;;  %v153_v42 = vsub.s32 0, %v152_v41  ;;  %v149_v43 = vld [vmem:[%s1298_s2] sm:$0x3]  ;;  %p1228_p13 = por %p1227_p12, %p1226_p11 }
  0x49   :  { %734 = vmatprep.subr.bf16.mxu1 %v1091_v45 }
  0x4a   :  { %v154_v44 = vrot.slane %v149_v43, %v153_v42  ;;  %p1229_p0 = pnand %p1228_p13, %p1222_p10 }
  0x4b   :  { %694 = vmatpush2.bf16.msra.mxu0 %v1090_v46 }
  0x4c   :  { %695 = vmatprep.subr.bf16.mxu0 %v1094_v48  ;;  %735 = vmatpush2.bf16.msra.mxu1 %v1093_v49 }
  0x4d   :  { %736 = vmatprep.subr.bf16.mxu1 %v1097_v50 }
  0x4f   :  { %696 = vmatpush2.bf16.msra.mxu0 %v1096_v52 }
  0x50   :  { %697 = vmatprep.subr.bf16.mxu0 %v1100_v53  ;;  %737 = vmatpush2.bf16.msra.mxu1 %v1099_v54  ;;  %v157_v53 = vsub.s32 1, %v152_v41 }
  0x51   :  { %738 = vmatprep.subr.bf16.mxu1 %v1103_v55  ;;  %v1176_v39 = vpop.eup %1175 }
  0x52   :  { %1011 = vpush %v1176_v39  ;;  %v158_v54 = vrot.slane %v149_v43, %v157_v53 }
  0x53   :  { %698 = vmatpush2.bf16.msra.mxu0 %v1102_v56 }
  0x54   :  { %699 = vmatprep.subr.bf16.mxu0 %v1106_v57  ;;  %739 = vmatpush2.bf16.msra.mxu1 %v1105_v58 }
  0x55   :  { %740 = vmatprep.subr.bf16.mxu1 %v1109_v59 }
  0x57   :  { %700 = vmatpush2.bf16.msra.mxu0 %v1108_v60 }
  0x58   :  { %701 = vmatprep.subr.bf16.mxu0 %v1112_v61  ;;  %741 = vmatpush2.bf16.msra.mxu1 %v1111_v62 }
  0x59   :  { %742 = vmatprep.subr.bf16.mxu1 %v1115_v63 }
  0x5b   :  { %702 = vmatpush2.bf16.msra.mxu0 %v1114_v0 }
  0x5c   :  { %753 = vmatprep.subr.bf16.mxu0 %v1123_v1  ;;  %743 = vmatpush2.bf16.msra.mxu1 %v1120_v2 }
  0x5e   :  { %704 = vmatmul.mubr.bf16.vlgmr.msra.gmra.mxu0 %v1117_v3 }
  0x5f   :  { %754 = vmatpush1.bf16.msra.mxu0 %v1121_v4  ;;  %745 = vmatmul.mubr.bf16.vlgmr.msra.gmra.mxu1 %v1124_v5  ;;  %v1253_v5 = vmov 0.0  }
  0x60   :  { %755 = vmatprep.subr.bf16.mxu0 %v1129_v6  ;;  %785 = vmatprep.mubr.bf16.mxu0 %v1174_v8 }
  0x61   :  { %1006 = vmatprep.subr.mxu1 %v1253_v5  ;;  %1008 = vmatprep.mubr.msk.f32.mxu1 %vm1254_vm0, %v1253_v5 }
  0x63   :  { %756 = vmatpush1.bf16.msra.mxu0 %v1127_v7 }
  0x64   :  { %757 = vmatprep.subr.bf16.mxu0 %v1132_v9 }
  0x67   :  { %758 = vmatpush1.bf16.msra.mxu0 %v1130_v10 }
  0x68   :  { %759 = vmatprep.subr.bf16.mxu0 %v1135_v11 }
  0x6b   :  { %760 = vmatpush1.bf16.msra.mxu0 %v1133_v12 }
  0x6c   :  { %761 = vmatprep.subr.bf16.mxu0 %v1138_v13 }
  0x6f   :  { %762 = vmatpush1.bf16.msra.mxu0 %v1136_v14 }
  0x70   :  { %763 = vmatprep.subr.bf16.mxu0 %v1141_v15 }
  0x73   :  { %764 = vmatpush1.bf16.msra.mxu0 %v1139_v16 }
  0x74   :  { %765 = vmatprep.subr.bf16.mxu0 %v1144_v17 }
  0x77   :  { %766 = vmatpush1.bf16.msra.mxu0 %v1142_v18 }
  0x78   :  { %767 = vmatprep.subr.bf16.mxu0 %v1147_v19 }
  0x7b   :  { %768 = vmatpush1.bf16.msra.mxu0 %v1145_v20 }
  0x7c   :  { %769 = vmatprep.subr.bf16.mxu0 %v1150_v21 }
  0x7f   :  { %770 = vmatpush2.bf16.msra.mxu0 %v1148_v22 }
  0x80   :  { %771 = vmatprep.subr.bf16.mxu0 %v1153_v23 }
  0x83   :  { %772 = vmatpush2.bf16.msra.mxu0 %v1151_v24  ;;  %s1012_s2 = spop %1011 }
  0x84   :  { %773 = vmatprep.subr.bf16.mxu0 %v1156_v25  ;;  %v805_v12 = vstv %s1012_s2 }
  0x87   :  { %774 = vmatpush2.bf16.msra.mxu0 %v1154_v26 }
  0x88   :  { %775 = vmatprep.subr.bf16.mxu0 %v1159_v27 }
  0x8b   :  { %776 = vmatpush2.bf16.msra.mxu0 %v1157_v28 }
  0x8c   :  { %777 = vmatprep.subr.bf16.mxu0 %v1162_v29 }
  0x8f   :  { %778 = vmatpush2.bf16.msra.mxu0 %v1160_v30 }
  0x90   :  { %779 = vmatprep.subr.bf16.mxu0 %v1165_v31 }
  0x93   :  { %780 = vmatpush2.bf16.msra.mxu0 %v1163_v32 }
  0x94   :  { %781 = vmatprep.subr.bf16.mxu0 %v1168_v33 }
  0x97   :  { %782 = vmatpush2.bf16.msra.mxu0 %v1166_v34 }
  0x98   :  { %783 = vmatprep.subr.bf16.mxu0 %v1171_v35 }
  0x9b   :  { %784 = vmatpush2.bf16.msra.mxu0 %v1169_v36 }
  0x9e   :  { %786 = vmatmul.mubr.bf16.vlgmr.msra.gmra.mxu0 %v1172_v37 }
 0x11e   :  { %v705_v45 = vpop.f32.mrf.mxu0 }
 0x11f   :  { %v706_v46 = vadd.f32 %v705_v45, %v154_v44  ;;  %v746_v48 = vpop.f32.mrf.mxu1 }
 0x120   :  { %v707_v47 = vpop.f32.mrf.mxu0 }
 0x121   :  { %v747_v49 = vadd.f32 %v746_v48, %v706_v46  ;;  %v748_v51 = vpop.f32.mrf.mxu1 }
 0x122   :  { %v708_v50 = vpop.f32.mrf.mxu0 }
 0x123   :  { %v749_v52 = vpop.f32.mrf.mxu1 }
 0x124   :  { %v709_v55 = vpop.f32.mrf.mxu0 }
 0x125   :  { %v710_v57 = vadd.f32 %v709_v55, %v158_v54  ;;  %v750_v58 = vpop.f32.mrf.mxu1 }
 0x127   :  { %v751_v61 = vadd.f32 %v750_v58, %v710_v57 }
 0x15e   :  { %v787_v56 = vpop.f32.mrf.mxu0 }
 0x15f   :  { %v788_v63 = vadd.f32 %v787_v56, %v747_v49 }
 0x160   :  { %v789_v59 = vpop.f32.mrf.mxu0 }
 0x161   :  { %v794_v2 = vmax.f32 %v788_v63, 0.0 }
 0x162   :  { %v790_v60 = vpop.f32.mrf.mxu0 }
 0x163   :  { %v800_v4 = vmul.f32 %v794_v2, %v794_v2 }
 0x164   :  { %v791_v62 = vpop.f32.mrf.mxu0 }
 0x165   :  { %v792_v0 = vadd.f32 %v791_v62, %v751_v61 }
 0x167   :  { %v795_v1 = vmax.f32 %v792_v0, 0.0 }
 0x169   :  { %v808_v3 = vmul.f32 %v795_v1, %v795_v1 }
 0x16b   :  { %809 = vadd.xlane.f32.xlu0 %v808_v3 }
 0x16f   :  { %801 = vadd.xlane.f32.xlu0 %v800_v4 }
 0x1f4   :  { %v810_v6 = vpop.xlane.xlu0 %809 }
 0x1f5   :  { %v811_v7 = vmax.f32 %v810_v6, 1e-24 }
 0x1f7   :  { %1177 = vrsqrt.f32 %v811_v7 }
 0x1f8   :  { %v802_v8 = vpop.xlane.xlu0 %801 }
 0x1f9   :  { %v803_v9 = vmax.f32 %v802_v8, 1e-24 }
 0x1fb   :  { %1179 = vrsqrt.f32 %v803_v9 }
 0x204   :  { %v1178_v10 = vpop.eup %1177 }
 0x205   :  { %v813_v11 = vmul.f32 %v1178_v10, %v795_v1 }
 0x207   :  { %1007 = vmatpush3.xpose.msra.mxu1 %v813_v11 }
 0x208   :  { %v1180_v13 = vpop.eup %1179 }
 0x209   :  { %v806_v14 = vmul.f32 %v1180_v13, %v805_v12 }
 0x20b   :  { %v807_v15 = vmul.f32 %v806_v14, %v794_v2 }
 0x20d   :  { %1009 = vmatmul.mubr.f32.vlgmr.msra.gmra.mxu1 %v807_v15 }
 0x2cd   :  { %v880_v16 = vpop.f32.mrf.mxu1 }
 0x2ce   :  { %885 = vst.msk [vmem:[#allocation8] sm:$0xff] %vm884_vm1, %v880_v16 }
 0x2cf   :  { %v1010_v17 = vpop.f32.mrf.mxu1 }
 0x2d0   :  { %1232 = shalt.err (!%p1229_p0)
}
 0x2d1   :  { %895 = dma.vmem_to_hbm [thread:$0]  %s893_s5, 128, %s1300_s4, [#allocation5]  }
 0x2d2   :  { %1245 = dma.done.wait [#allocation5], 128  }
 0x2d3   :  { %1246 = vsyncadd [#allocation5], 4294967168 }
 0x2d4   :  { %899 = vsyncpa [#allocation4], 1 }
 0x2d5   :  { %900 = vsyncpa [#allocation7], 1 }
 0x2d6   :  { %901 = vsyncpa [#allocation5], 1 }

</bundles_post_ra>
